<compile_context>
chip_gen: v6e
topology: v6e:2x2x1
jax: 0.10.0
libtpu: 0.0.40
codegen_flags: <defaults>
</compile_context>

<pallas_src>
import numpy as np
import jax
import jax.numpy as jnp
from jax.experimental import pallas as pl
from jax.experimental.pallas import tpu as pltpu

BN_EPS = 1e-5
NUM_HIDDEN = 3  # AutoregressiveTransfrom default; the kernel hard-codes 3 hidden layers.


# ------------------------------------------------------------------ slab layout helper
def _slab_offsets(a, h2):
    """Row offsets of each parameter block inside one layer's packed (R, 2H) slab.

    a  = D + 1 (augmented input width: z plus the carried log_df_dz column)
    h2 = 2 * base_filters (fused s|t hidden width)
    """
    o_w1, o_w2, o_w3 = 0, h2, 2 * h2   # (2H,2H) matmul operands first -> 8-row aligned
    o_w0 = 3 * h2                      # (A,2H) layer-0 weights, perm + logdet-zero-row folded in
    o_p = o_w0 + a                     # (A,2H) padded permutation matrix (zp = x @ P_aug)
    o_g = o_p + a                      # 3 rows: BN gamma for hidden layers 0..2
    o_b = o_g + 3                      # 3 rows: BN beta
    o_b3 = o_b + 3                     # 1 row : final biases [b3_s | b3_t], zero-padded
    o_sls = o_b3 + 1                   # 1 row : s_log_scale (broadcast across lanes)
    o_sb = o_sls + 1                   # 1 row : s_bias
    return o_w0, o_p, o_w1, o_w2, o_w3, o_g, o_b, o_b3, o_sls, o_sb, o_sb + 1


# --------------------------------------------------------------------------- kernel
def _maf_stack_kernel(x_ref, slab_ref, y_ref, carry):
    """One grid step = one fused (s,t) coupling layer; activation carried in VMEM.

    x_ref    : (B, D+1)      combined [z | log_df_dz] input (read at layer 0 only)
    slab_ref : (1, R, 2H)    this layer's packed parameter slab
    y_ref    : (B, D+1)      combined [z_out | log_df_dz_out] (written at last layer)
    carry    : (B, D+1) VMEM scratch — activation resident across grid steps
    """
    li = pl.program_id(0)

    @pl.when(li == 0)
    def _():
        carry[...] = x_ref[...]

    b, a = carry.shape
    d = a - 1
    h2 = slab_ref.shape[-1]
    inv_b = 1.0 / b
    (o_w0, o_p, o_w1, o_w2, o_w3,
     o_g, o_b, o_b3, o_sls, o_sb, _) = _slab_offsets(a, h2)

    x = carry[...]
    ones_row = jnp.ones((1, b), dtype=jnp.float32)

    def bn_relu(pre, i):
        # Batch statistics on the (otherwise idle) MXU: one (1,B)@(B,2*2H) matmul gives
        # sum and sum-of-squares, instead of two serial cross-sublane XLU reductions.
        s12 = jnp.dot(ones_row, jnp.concatenate([pre, pre * pre], axis=1),
                      preferred_element_type=jnp.float32)
        mean = s12[:, :h2] * inv_b
        var = jnp.maximum(s12[:, h2:] * inv_b - mean * mean, 0.0)  # clamp: cancellation guard
        gamma = slab_ref[0, o_g + i:o_g + i + 1, :]
        beta = slab_ref[0, o_b + i:o_b + i + 1, :]
        hn = (pre - mean) * jax.lax.rsqrt(var + BN_EPS) * gamma + beta
        return jnp.maximum(hn, 0.0)  # ReLU

    # Layer 0: permutation folded into the weights host-side (x @ (P*W0) == zp @ W0);
    # the log_df_dz column hits a zero row.  zp itself comes from the padded perm matrix.
    pre0 = jnp.dot(x, slab_ref[0, o_w0:o_w0 + a, :], preferred_element_type=jnp.float32)
    zp = jnp.dot(x, slab_ref[0, o_p:o_p + a, :], preferred_element_type=jnp.float32)[:, :d]

    # Hidden-layer biases omitted on purpose: training-mode BN mean subtraction cancels them.
    h = bn_relu(pre0, 0)
    h = bn_relu(jnp.dot(h, slab_ref[0, o_w1:o_w1 + h2, :],
                        preferred_element_type=jnp.float32), 1)
    h = bn_relu(jnp.dot(h, slab_ref[0, o_w2:o_w2 + h2, :],
                        preferred_element_type=jnp.float32), 2)
    out = (jnp.dot(h, slab_ref[0, o_w3:o_w3 + h2, :], preferred_element_type=jnp.float32)
           + slab_ref[0, o_b3:o_b3 + 1, :])           # (B, 2H): cols 0:D = s_raw, D:2D = t

    s = (jnp.tanh(out[:, :d]) * slab_ref[0, o_sls:o_sls + 1, :d]
         + slab_ref[0, o_sb:o_sb + 1, :d])
    t = out[:, d:2 * d]
    z_new = zp * jnp.exp(s) + t
    logdet_new = x[:, d:a] + jnp.sum(s, axis=1, keepdims=True)

    y = jnp.concatenate([z_new, logdet_new], axis=1)   # (B, D+1) combined carry/output
    carry[...] = y

    @pl.when(li == pl.num_programs(0) - 1)
    def _():
        y_ref[...] = y


# ----------------------------------------------------------------------------- glue
def autoregressive_transform(z, log_df_dz, slab_stack):
    """Runs a stack of L fused MAF coupling layers in a single Pallas call.

    slab_stack: (L, R, 2H) packed per-layer parameters (see _pack_layer)."""
    B, D = z.shape
    L, R, H2 = slab_stack.shape
    A = D + 1
    x = jnp.concatenate([z, log_df_dz.reshape(B, 1).astype(z.dtype)], axis=1)

    y = pl.pallas_call(
        _maf_stack_kernel,
        out_shape=jax.ShapeDtypeStruct((B, A), jnp.float32),
        grid_spec=pltpu.PrefetchScalarGridSpec(
            num_scalar_prefetch=0,
            grid=(L,),
            in_specs=[pl.BlockSpec((B, A), lambda l: (0, 0)),
                      pl.BlockSpec((1, R, H2), lambda l: (l, 0, 0))],
            out_specs=pl.BlockSpec((B, A), lambda l: (0, 0)),
            scratch_shapes=[pltpu.VMEM((B, A), jnp.float32)]),
        compiler_params=pltpu.CompilerParams(
            dimension_semantics=("arbitrary",)),   # layers are sequential (carry dependency)
    )(x, slab_stack)
    return y[:, :D], y[:, D]


# ----------------------------------------------------- deterministic parameter building
def _make_masks(rng, d, num_hidden, base_filters):
    """Deterministic replica of MADE._create_masks (np.random replaced by rng)."""
    m_prev = np.arange(d)
    hidden_dims = [d] + [base_filters] * num_hidden
    masks = []
    for in_dims, out_dims in zip(hidden_dims[:-1], hidden_dims[1:]):
        min_k = min(int(m_prev.min()), d - 2)
        m = rng.randint(min_k, d - 1, size=out_dims)
        masks.append((m_prev[None, :] <= m[:, None]).astype(np.float32))  # (out, in)
        m_prev = m
    M = np.zeros((d, hidden_dims[-1]), dtype=np.float32)
    for k in range(hidden_dims[-1]):
        M[m_prev[k] + 1:, k] = 1.0
    masks.append(M)
    return masks


def _make_made_raw(rng, d, num_hidden, base_filters):
    """Masked weights pre-transposed to (in, out) + biases for one MADE net."""
    hidden_dims = [d] + [base_filters] * num_hidden
    masks = _make_masks(rng, d, num_hidden, base_filters)
    Ws, bs = [], []
    for li, (in_dims, out_dims) in enumerate(zip(hidden_dims[:-1], hidden_dims[1:])):
        scale = np.sqrt(2.0 / (out_dims + in_dims))
        W = rng.randn(out_dims, in_dims).astype(np.float32) * scale
        b = rng.randn(out_dims).astype(np.float32) * 0.01
        Ws.append((W * masks[li]).T)                 # (in, out)
        bs.append(b)
    scale = np.sqrt(2.0 / (d + hidden_dims[-1]))
    W = rng.randn(d, hidden_dims[-1]).astype(np.float32) * scale
    b = rng.randn(d).astype(np.float32) * 0.01
    Ws.append((W * masks[-1]).T)                     # (H, d)
    bs.append(b)
    return Ws, bs


def _pack_layer(perm_idx, net_s, net_t, sls, sbias, d, base_filters):
    """Packs one coupling layer into a single (R, 2H) f32 slab (fused block-diag nets)."""
    H = base_filters
    A, H2 = d + 1, 2 * H
    Ws_s, bs_s = net_s
    Ws_t, bs_t = net_t
    (o_w0, o_p, o_w1, o_w2, o_w3,
     o_g, o_b, o_b3, o_sls, o_sb, rows) = _slab_offsets(A, H2)
    R = rows + (-rows) % 8                            # sublane-friendly row padding
    slab = np.zeros((R, H2), np.float32)

    Pm = np.eye(d, dtype=np.float32)[:, perm_idx]     # zp = z @ Pm
    W0f = np.concatenate([Ws_s[0], Ws_t[0]], axis=1)  # (d, 2H)
    slab[o_w0:o_w0 + d] = Pm @ W0f                    # perm folded; logdet row stays zero
    slab[o_p:o_p + d, :d] = Pm
    slab[o_w1:o_w1 + H, :H] = Ws_s[1]
    slab[o_w1 + H:o_w1 + H2, H:] = Ws_t[1]
    slab[o_w2:o_w2 + H, :H] = Ws_s[2]
    slab[o_w2 + H:o_w2 + H2, H:] = Ws_t[2]
    slab[o_w3:o_w3 + H, :d] = Ws_s[3]
    slab[o_w3 + H:o_w3 + H2, d:2 * d] = Ws_t[3]
    slab[o_g:o_g + 3] = 1.0                           # BatchNorm1d gamma init (beta rows = 0)
    slab[o_b3, :d] = bs_s[3]
    slab[o_b3, d:2 * d] = bs_t[3]
    slab[o_sls] = sls
    slab[o_sb] = sbias
    # Hidden-layer biases are not packed: training-mode BN cancels them exactly.
    return slab


# ----------------------------------------------------------------------- plain-JAX ref
def _reference_layer(z, log_df_dz, layer):
    """Unfused reference matching the PyTorch math (explicit perm matmul, hidden biases
    included, two-pass BN variance) — ground truth for the checks."""
    perm_idx, (Ws_s, bs_s), (Ws_t, bs_t), sls, sb = layer
    d = z.shape[1]
    pm = jnp.asarray(np.eye(d, dtype=np.float32)[:, perm_idx])

    def made(x, Ws, bs):
        hh = x
        for i in range(len(Ws) - 1):
            pre = hh @ jnp.asarray(Ws[i]) + jnp.asarray(bs[i])
            mean = jnp.mean(pre, axis=0, keepdims=True)
            var = jnp.mean((pre - mean) ** 2, axis=0, keepdims=True)
            hh = jnp.maximum((pre - mean) * jax.lax.rsqrt(var + BN_EPS), 0.0)
        return hh @ jnp.asarray(Ws[-1]) + jnp.asarray(bs[-1])

    zp = z @ pm
    s = jnp.tanh(made(zp, Ws_s, bs_s)) * sls + sb
    t = made(zp, Ws_t, bs_t)
    return zp * jnp.exp(s) + t, log_df_dz + jnp.sum(s, axis=1)


if __name__ == "__main__":
    B, D, H = 4, 8, 32
    L = 3                                   # demo: 3 stacked coupling layers, one pallas_call
    rng = np.random.RandomState(0)

    layers, slabs = [], []
    for _ in range(L):
        perm_idx = rng.permutation(D)
        net_s = _make_made_raw(rng, D, NUM_HIDDEN, H)
        net_t = _make_made_raw(rng, D, NUM_HIDDEN, H)
        sls = float(rng.randn() * 0.01)
        sb = float(rng.randn() * 0.01)
        layers.append((perm_idx, net_s, net_t, sls, sb))
        slabs.append(_pack_layer(perm_idx, net_s, net_t, sls, sb, D, H))
    slab_stack = jnp.asarray(np.stack(slabs, axis=0))   # (L, R, 2H)

    key = jax.random.PRNGKey(0)
    k1, k2 = jax.random.split(key)
    z = jax.random.normal(k1, (B, D), dtype=jnp.float32)
    log_df_dz = jax.random.normal(k2, (B,), dtype=jnp.float32)

    # ---- single layer: exactly one AutoregressiveTransfrom.forward ----
    z1, ld1 = autoregressive_transform(z, log_df_dz, slab_stack[:1])
    jax.block_until_ready((z1, ld1))
    z1_ref, ld1_ref = _reference_layer(z, log_df_dz, layers[0])
    np.testing.assert_allclose(np.asarray(z1), np.asarray(z1_ref), rtol=1e-4, atol=1e-4)
    np.testing.assert_allclose(np.asarray(ld1), np.asarray(ld1_ref), rtol=1e-4, atol=1e-4)

    # ---- L stacked layers fused into ONE pallas_call (amortized dispatch/DMA) ----
    zL, ldL = autoregressive_transform(z, log_df_dz, slab_stack)
    jax.block_until_ready((zL, ldL))
    zr, lr = z, log_df_dz
    for lay in layers:
        zr, lr = _reference_layer(zr, lr, lay)
    np.testing.assert_allclose(np.asarray(zL), np.asarray(zr), rtol=5e-4, atol=5e-4)
    np.testing.assert_allclose(np.asarray(ldL), np.asarray(lr), rtol=5e-4, atol=5e-4)

    print("KERNEL_OK")
</pallas_src>

<mosaic_0001>
module attributes {stable_mosaic.version = 11 : i64} {
  func.func @_maf_stack_kernel(%arg0: i32, %arg1: memref<4x9xf32, #tpu.memory_space<vmem>>, %arg2: memref<1x224x64xf32, #tpu.memory_space<vmem>>, %arg3: memref<4x9xf32, #tpu.memory_space<vmem>>, %arg4: memref<4x9xf32, #tpu.memory_space<vmem>>) attributes {dimension_semantics = [#tpu.dimension_semantics<arbitrary>], iteration_bounds = array<i64: 1>, scalar_prefetch = 0 : i64, scratch_operands = 1 : i64, tpu.core_type = #tpu.core_type<tc>, window_params = [{pipeline_mode = #tpu.pipeline_mode<synchronous>, transform_indices = @transform_0, window_bounds = array<i64: 4, 9>}, {transform_indices = @transform_1, window_bounds = array<i64: 1, 224, 64>}, {pipeline_mode = #tpu.pipeline_mode<synchronous>, transform_indices = @transform_2, window_bounds = array<i64: 4, 9>}]} {
    %c0_i32 = arith.constant 0 : i32
    %0 = arith.cmpi eq, %arg0, %c0_i32 : i32
    %1 = arith.extui %0 : i1 to i32
    %c0_i32_0 = arith.constant 0 : i32
    %2 = arith.cmpi ne, %1, %c0_i32_0 : i32
    scf.if %2 {
      %c0_59 = arith.constant 0 : index
      %c0_60 = arith.constant 0 : index
      %138 = vector.load %arg1[%c0_59, %c0_60] : memref<4x9xf32, #tpu.memory_space<vmem>>, vector<4x9xf32>
      %c0_61 = arith.constant 0 : index
      %c0_62 = arith.constant 0 : index
      %139 = vector.load %arg4[%c0_61, %c0_62] : memref<4x9xf32, #tpu.memory_space<vmem>>, vector<4x9xf32>
      tpu.vector_store %arg4[%c0_61, %c0_62], %138 {strides = array<i32>} : memref<4x9xf32, #tpu.memory_space<vmem>>, vector<4x9xf32>,
    } else {
    }
    %c0 = arith.constant 0 : index
    %c0_1 = arith.constant 0 : index
    %3 = vector.load %arg4[%c0, %c0_1] : memref<4x9xf32, #tpu.memory_space<vmem>>, vector<4x9xf32>
    %cst = arith.constant 1.000000e+00 : f32
    %4 = vector.broadcast %cst : f32 to vector<1x4xf32>
    %c0_2 = arith.constant 0 : index
    %c192 = arith.constant 192 : index
    %c0_3 = arith.constant 0 : index
    %5 = vector.load %arg2[%c0_2, %c192, %c0_3] : memref<1x224x64xf32, #tpu.memory_space<vmem>>, vector<1x9x64xf32>
    %6 = vector.shape_cast %5 : vector<1x9x64xf32> to vector<9x64xf32>
    %cst_4 = arith.constant dense<0.000000e+00> : vector<4x64xf32>
    %7 = tpu.matmul %3, %6, %cst_4 {dimension_numbers = #tpu.dot_dimension_numbers<[1], [0], [0], [1], [0, 0, 1, 1], [], []>} : vector<4x9xf32>, vector<9x64xf32>, vector<4x64xf32> -> vector<4x64xf32>
    %c0_5 = arith.constant 0 : index
    %c201 = arith.constant 201 : index
    %c0_6 = arith.constant 0 : index
    %8 = vector.load %arg2[%c0_5, %c201, %c0_6] : memref<1x224x64xf32, #tpu.memory_space<vmem>>, vector<1x9x64xf32>
    %9 = vector.shape_cast %8 : vector<1x9x64xf32> to vector<9x64xf32>
    %cst_7 = arith.constant dense<0.000000e+00> : vector<4x64xf32>
    %10 = tpu.matmul %3, %9, %cst_7 {dimension_numbers = #tpu.dot_dimension_numbers<[1], [0], [0], [1], [0, 0, 1, 1], [], []>} : vector<4x9xf32>, vector<9x64xf32>, vector<4x64xf32> -> vector<4x64xf32>
    %11 = vector.extract_strided_slice %10 {offsets = [0, 0], sizes = [4, 8], strides = [1, 1]} : vector<4x64xf32> to vector<4x8xf32>
    %12 = arith.mulf %7, %7 : vector<4x64xf32>
    %13 = tpu.concatenate %7, %12 in 1 : vector<4x64xf32>, vector<4x64xf32> -> vector<4x128xf32>
    %cst_8 = arith.constant dense<0.000000e+00> : vector<1x128xf32>
    %14 = tpu.matmul %4, %13, %cst_8 {dimension_numbers = #tpu.dot_dimension_numbers<[1], [0], [0], [1], [0, 0, 1, 1], [], []>} : vector<1x4xf32>, vector<4x128xf32>, vector<1x128xf32> -> vector<1x128xf32>
    %15 = vector.extract_strided_slice %14 {offsets = [0, 0], sizes = [1, 64], strides = [1, 1]} : vector<1x128xf32> to vector<1x64xf32>
    %cst_9 = arith.constant 2.500000e-01 : f32
    %16 = vector.broadcast %cst_9 : f32 to vector<1x64xf32>
    %17 = arith.mulf %15, %16 : vector<1x64xf32>
    %18 = vector.extract_strided_slice %14 {offsets = [0, 64], sizes = [1, 64], strides = [1, 1]} : vector<1x128xf32> to vector<1x64xf32>
    %cst_10 = arith.constant 2.500000e-01 : f32
    %19 = vector.broadcast %cst_10 : f32 to vector<1x64xf32>
    %20 = arith.mulf %18, %19 : vector<1x64xf32>
    %21 = arith.mulf %17, %17 : vector<1x64xf32>
    %22 = arith.subf %20, %21 : vector<1x64xf32>
    %cst_11 = arith.constant 0.000000e+00 : f32
    %23 = vector.broadcast %cst_11 : f32 to vector<1x64xf32>
    %24 = arith.maximumf %22, %23 : vector<1x64xf32>
    %c0_12 = arith.constant 0 : index
    %c210 = arith.constant 210 : index
    %c0_13 = arith.constant 0 : index
    %25 = vector.load %arg2[%c0_12, %c210, %c0_13] : memref<1x224x64xf32, #tpu.memory_space<vmem>>, vector<1x1x64xf32>
    %26 = vector.shape_cast %25 : vector<1x1x64xf32> to vector<1x64xf32>
    %c0_14 = arith.constant 0 : index
    %c213 = arith.constant 213 : index
    %c0_15 = arith.constant 0 : index
    %27 = vector.load %arg2[%c0_14, %c213, %c0_15] : memref<1x224x64xf32, #tpu.memory_space<vmem>>, vector<1x1x64xf32>
    %28 = vector.shape_cast %27 : vector<1x1x64xf32> to vector<1x64xf32>
    %29 = vector.broadcast %17 : vector<1x64xf32> to vector<4x64xf32>
    %30 = arith.subf %7, %29 : vector<4x64xf32>
    %cst_16 = arith.constant 9.99999974E-6 : f32
    %31 = vector.broadcast %cst_16 : f32 to vector<1x64xf32>
    %32 = arith.addf %24, %31 : vector<1x64xf32>
    %33 = math.rsqrt %32 : vector<1x64xf32>
    %34 = vector.broadcast %33 : vector<1x64xf32> to vector<4x64xf32>
    %35 = arith.mulf %30, %34 : vector<4x64xf32>
    %36 = vector.broadcast %26 : vector<1x64xf32> to vector<4x64xf32>
    %37 = arith.mulf %35, %36 : vector<4x64xf32>
    %38 = vector.broadcast %28 : vector<1x64xf32> to vector<4x64xf32>
    %39 = arith.addf %37, %38 : vector<4x64xf32>
    %cst_17 = arith.constant 0.000000e+00 : f32
    %40 = vector.broadcast %cst_17 : f32 to vector<4x64xf32>
    %41 = arith.maximumf %39, %40 : vector<4x64xf32>
    %c0_18 = arith.constant 0 : index
    %c0_19 = arith.constant 0 : index
    %c0_20 = arith.constant 0 : index
    %42 = vector.load %arg2[%c0_18, %c0_19, %c0_20] : memref<1x224x64xf32, #tpu.memory_space<vmem>>, vector<1x64x64xf32>
    %43 = vector.shape_cast %42 : vector<1x64x64xf32> to vector<64x64xf32>
    %cst_21 = arith.constant dense<0.000000e+00> : vector<4x64xf32>
    %44 = tpu.matmul %41, %43, %cst_21 {dimension_numbers = #tpu.dot_dimension_numbers<[1], [0], [0], [1], [0, 0, 1, 1], [], []>} : vector<4x64xf32>, vector<64x64xf32>, vector<4x64xf32> -> vector<4x64xf32>
    %45 = arith.mulf %44, %44 : vector<4x64xf32>
    %46 = tpu.concatenate %44, %45 in 1 : vector<4x64xf32>, vector<4x64xf32> -> vector<4x128xf32>
    %cst_22 = arith.constant dense<0.000000e+00> : vector<1x128xf32>
    %47 = tpu.matmul %4, %46, %cst_22 {dimension_numbers = #tpu.dot_dimension_numbers<[1], [0], [0], [1], [0, 0, 1, 1], [], []>} : vector<1x4xf32>, vector<4x128xf32>, vector<1x128xf32> -> vector<1x128xf32>
    %48 = vector.extract_strided_slice %47 {offsets = [0, 0], sizes = [1, 64], strides = [1, 1]} : vector<1x128xf32> to vector<1x64xf32>
    %cst_23 = arith.constant 2.500000e-01 : f32
    %49 = vector.broadcast %cst_23 : f32 to vector<1x64xf32>
    %50 = arith.mulf %48, %49 : vector<1x64xf32>
    %51 = vector.extract_strided_slice %47 {offsets = [0, 64], sizes = [1, 64], strides = [1, 1]} : vector<1x128xf32> to vector<1x64xf32>
    %cst_24 = arith.constant 2.500000e-01 : f32
    %52 = vector.broadcast %cst_24 : f32 to vector<1x64xf32>
    %53 = arith.mulf %51, %52 : vector<1x64xf32>
    %54 = arith.mulf %50, %50 : vector<1x64xf32>
    %55 = arith.subf %53, %54 : vector<1x64xf32>
    %cst_25 = arith.constant 0.000000e+00 : f32
    %56 = vector.broadcast %cst_25 : f32 to vector<1x64xf32>
    %57 = arith.maximumf %55, %56 : vector<1x64xf32>
    %c0_26 = arith.constant 0 : index
    %c211 = arith.constant 211 : index
    %c0_27 = arith.constant 0 : index
    %58 = vector.load %arg2[%c0_26, %c211, %c0_27] : memref<1x224x64xf32, #tpu.memory_space<vmem>>, vector<1x1x64xf32>
    %59 = vector.shape_cast %58 : vector<1x1x64xf32> to vector<1x64xf32>
    %c0_28 = arith.constant 0 : index
    %c214 = arith.constant 214 : index
    %c0_29 = arith.constant 0 : index
    %60 = vector.load %arg2[%c0_28, %c214, %c0_29] : memref<1x224x64xf32, #tpu.memory_space<vmem>>, vector<1x1x64xf32>
    %61 = vector.shape_cast %60 : vector<1x1x64xf32> to vector<1x64xf32>
    %62 = vector.broadcast %50 : vector<1x64xf32> to vector<4x64xf32>
    %63 = arith.subf %44, %62 : vector<4x64xf32>
    %cst_30 = arith.constant 9.99999974E-6 : f32
    %64 = vector.broadcast %cst_30 : f32 to vector<1x64xf32>
    %65 = arith.addf %57, %64 : vector<1x64xf32>
    %66 = math.rsqrt %65 : vector<1x64xf32>
    %67 = vector.broadcast %66 : vector<1x64xf32> to vector<4x64xf32>
    %68 = arith.mulf %63, %67 : vector<4x64xf32>
    %69 = vector.broadcast %59 : vector<1x64xf32> to vector<4x64xf32>
    %70 = arith.mulf %68, %69 : vector<4x64xf32>
    %71 = vector.broadcast %61 : vector<1x64xf32> to vector<4x64xf32>
    %72 = arith.addf %70, %71 : vector<4x64xf32>
    %cst_31 = arith.constant 0.000000e+00 : f32
    %73 = vector.broadcast %cst_31 : f32 to vector<4x64xf32>
    %74 = arith.maximumf %72, %73 : vector<4x64xf32>
    %c0_32 = arith.constant 0 : index
    %c64 = arith.constant 64 : index
    %c0_33 = arith.constant 0 : index
    %75 = vector.load %arg2[%c0_32, %c64, %c0_33] : memref<1x224x64xf32, #tpu.memory_space<vmem>>, vector<1x64x64xf32>
    %76 = vector.shape_cast %75 : vector<1x64x64xf32> to vector<64x64xf32>
    %cst_34 = arith.constant dense<0.000000e+00> : vector<4x64xf32>
    %77 = tpu.matmul %74, %76, %cst_34 {dimension_numbers = #tpu.dot_dimension_numbers<[1], [0], [0], [1], [0, 0, 1, 1], [], []>} : vector<4x64xf32>, vector<64x64xf32>, vector<4x64xf32> -> vector<4x64xf32>
    %78 = arith.mulf %77, %77 : vector<4x64xf32>
    %79 = tpu.concatenate %77, %78 in 1 : vector<4x64xf32>, vector<4x64xf32> -> vector<4x128xf32>
    %cst_35 = arith.constant dense<0.000000e+00> : vector<1x128xf32>
    %80 = tpu.matmul %4, %79, %cst_35 {dimension_numbers = #tpu.dot_dimension_numbers<[1], [0], [0], [1], [0, 0, 1, 1], [], []>} : vector<1x4xf32>, vector<4x128xf32>, vector<1x128xf32> -> vector<1x128xf32>
    %81 = vector.extract_strided_slice %80 {offsets = [0, 0], sizes = [1, 64], strides = [1, 1]} : vector<1x128xf32> to vector<1x64xf32>
    %cst_36 = arith.constant 2.500000e-01 : f32
    %82 = vector.broadcast %cst_36 : f32 to vector<1x64xf32>
    %83 = arith.mulf %81, %82 : vector<1x64xf32>
    %84 = vector.extract_strided_slice %80 {offsets = [0, 64], sizes = [1, 64], strides = [1, 1]} : vector<1x128xf32> to vector<1x64xf32>
    %cst_37 = arith.constant 2.500000e-01 : f32
    %85 = vector.broadcast %cst_37 : f32 to vector<1x64xf32>
    %86 = arith.mulf %84, %85 : vector<1x64xf32>
    %87 = arith.mulf %83, %83 : vector<1x64xf32>
    %88 = arith.subf %86, %87 : vector<1x64xf32>
    %cst_38 = arith.constant 0.000000e+00 : f32
    %89 = vector.broadcast %cst_38 : f32 to vector<1x64xf32>
    %90 = arith.maximumf %88, %89 : vector<1x64xf32>
    %c0_39 = arith.constant 0 : index
    %c212 = arith.constant 212 : index
    %c0_40 = arith.constant 0 : index
    %91 = vector.load %arg2[%c0_39, %c212, %c0_40] : memref<1x224x64xf32, #tpu.memory_space<vmem>>, vector<1x1x64xf32>
    %92 = vector.shape_cast %91 : vector<1x1x64xf32> to vector<1x64xf32>
    %c0_41 = arith.constant 0 : index
    %c215 = arith.constant 215 : index
    %c0_42 = arith.constant 0 : index
    %93 = vector.load %arg2[%c0_41, %c215, %c0_42] : memref<1x224x64xf32, #tpu.memory_space<vmem>>, vector<1x1x64xf32>
    %94 = vector.shape_cast %93 : vector<1x1x64xf32> to vector<1x64xf32>
    %95 = vector.broadcast %83 : vector<1x64xf32> to vector<4x64xf32>
    %96 = arith.subf %77, %95 : vector<4x64xf32>
    %cst_43 = arith.constant 9.99999974E-6 : f32
    %97 = vector.broadcast %cst_43 : f32 to vector<1x64xf32>
    %98 = arith.addf %90, %97 : vector<1x64xf32>
    %99 = math.rsqrt %98 : vector<1x64xf32>
    %100 = vector.broadcast %99 : vector<1x64xf32> to vector<4x64xf32>
    %101 = arith.mulf %96, %100 : vector<4x64xf32>
    %102 = vector.broadcast %92 : vector<1x64xf32> to vector<4x64xf32>
    %103 = arith.mulf %101, %102 : vector<4x64xf32>
    %104 = vector.broadcast %94 : vector<1x64xf32> to vector<4x64xf32>
    %105 = arith.addf %103, %104 : vector<4x64xf32>
    %cst_44 = arith.constant 0.000000e+00 : f32
    %106 = vector.broadcast %cst_44 : f32 to vector<4x64xf32>
    %107 = arith.maximumf %105, %106 : vector<4x64xf32>
    %c0_45 = arith.constant 0 : index
    %c128 = arith.constant 128 : index
    %c0_46 = arith.constant 0 : index
    %108 = vector.load %arg2[%c0_45, %c128, %c0_46] : memref<1x224x64xf32, #tpu.memory_space<vmem>>, vector<1x64x64xf32>
    %109 = vector.shape_cast %108 : vector<1x64x64xf32> to vector<64x64xf32>
    %cst_47 = arith.constant dense<0.000000e+00> : vector<4x64xf32>
    %110 = tpu.matmul %107, %109, %cst_47 {dimension_numbers = #tpu.dot_dimension_numbers<[1], [0], [0], [1], [0, 0, 1, 1], [], []>} : vector<4x64xf32>, vector<64x64xf32>, vector<4x64xf32> -> vector<4x64xf32>
    %c0_48 = arith.constant 0 : index
    %c216 = arith.constant 216 : index
    %c0_49 = arith.constant 0 : index
    %111 = vector.load %arg2[%c0_48, %c216, %c0_49] : memref<1x224x64xf32, #tpu.memory_space<vmem>>, vector<1x1x64xf32>
    %112 = vector.shape_cast %111 : vector<1x1x64xf32> to vector<1x64xf32>
    %113 = vector.broadcast %112 : vector<1x64xf32> to vector<4x64xf32>
    %114 = arith.addf %110, %113 : vector<4x64xf32>
    %115 = vector.extract_strided_slice %114 {offsets = [0, 0], sizes = [4, 8], strides = [1, 1]} : vector<4x64xf32> to vector<4x8xf32>
    %116 = math.tanh %115 : vector<4x8xf32>
    %c0_50 = arith.constant 0 : index
    %c217 = arith.constant 217 : index
    %c0_51 = arith.constant 0 : index
    %117 = vector.load %arg2[%c0_50, %c217, %c0_51] : memref<1x224x64xf32, #tpu.memory_space<vmem>>, vector<1x1x8xf32>
    %118 = vector.shape_cast %117 : vector<1x1x8xf32> to vector<1x8xf32>
    %119 = vector.broadcast %118 : vector<1x8xf32> to vector<4x8xf32>
    %120 = arith.mulf %116, %119 : vector<4x8xf32>
    %c0_52 = arith.constant 0 : index
    %c218 = arith.constant 218 : index
    %c0_53 = arith.constant 0 : index
    %121 = vector.load %arg2[%c0_52, %c218, %c0_53] : memref<1x224x64xf32, #tpu.memory_space<vmem>>, vector<1x1x8xf32>
    %122 = vector.shape_cast %121 : vector<1x1x8xf32> to vector<1x8xf32>
    %123 = vector.broadcast %122 : vector<1x8xf32> to vector<4x8xf32>
    %124 = arith.addf %120, %123 : vector<4x8xf32>
    %125 = vector.extract_strided_slice %114 {offsets = [0, 8], sizes = [4, 8], strides = [1, 1]} : vector<4x64xf32> to vector<4x8xf32>
    %126 = math.exp %124 : vector<4x8xf32>
    %127 = arith.mulf %11, %126 : vector<4x8xf32>
    %128 = arith.addf %127, %125 : vector<4x8xf32>
    %129 = vector.extract_strided_slice %3 {offsets = [0, 8], sizes = [4, 1], strides = [1, 1]} : vector<4x9xf32> to vector<4x1xf32>
    %cst_54 = arith.constant dense<0.000000e+00> : vector<4xf32>
    %130 = vector.multi_reduction <add>, %124, %cst_54 [1] : vector<4x8xf32> to vector<4xf32>
    %131 = vector.shape_cast %130 : vector<4xf32> to vector<4x1xf32>
    %132 = arith.addf %129, %131 : vector<4x1xf32>
    %133 = tpu.concatenate %128, %132 in 1 : vector<4x8xf32>, vector<4x1xf32> -> vector<4x9xf32>
    %c0_55 = arith.constant 0 : index
    %c0_56 = arith.constant 0 : index
    %134 = vector.load %arg4[%c0_55, %c0_56] : memref<4x9xf32, #tpu.memory_space<vmem>>, vector<4x9xf32>
    tpu.vector_store %arg4[%c0_55, %c0_56], %133 {strides = array<i32>} : memref<4x9xf32, #tpu.memory_space<vmem>>, vector<4x9xf32>,
    %c0_i32_57 = arith.constant 0 : i32
    %135 = arith.cmpi eq, %arg0, %c0_i32_57 : i32
    %136 = arith.extui %135 : i1 to i32
    %c0_i32_58 = arith.constant 0 : i32
    %137 = arith.cmpi ne, %136, %c0_i32_58 : i32
    scf.if %137 {
      %c0_59 = arith.constant 0 : index
      %c0_60 = arith.constant 0 : index
      %138 = vector.load %arg3[%c0_59, %c0_60] : memref<4x9xf32, #tpu.memory_space<vmem>>, vector<4x9xf32>
      tpu.vector_store %arg3[%c0_59, %c0_60], %133 {strides = array<i32>} : memref<4x9xf32, #tpu.memory_space<vmem>>, vector<4x9xf32>,
    } else {
    }
    return
  }
  func.func @transform_0(%arg0: i32) -> (i32, i32) {
    %c0_i32 = arith.constant 0 : i32
    %c0_i32_0 = arith.constant 0 : i32
    %c0_i32_1 = arith.constant 0 : i32
    return %c0_i32, %c0_i32_0 : i32, i32
  }
  func.func @transform_1(%arg0: i32) -> (i32, i32, i32) {
    %c0_i32 = arith.constant 0 : i32
    %c0_i32_0 = arith.constant 0 : i32
    %c0_i32_1 = arith.constant 0 : i32
    return %arg0, %c0_i32, %c0_i32_0 : i32, i32, i32
  }
  func.func @transform_2(%arg0: i32) -> (i32, i32) {
    %c0_i32 = arith.constant 0 : i32
    %c0_i32_0 = arith.constant 0 : i32
    %c0_i32_1 = arith.constant 0 : i32
    return %c0_i32, %c0_i32_0 : i32, i32
  }
}

</mosaic_0001>

<bundles_post_ra>
// kernel: tpu_custom_call.1
= control target key start
LH: loop header
LB: loop body
LE: loop exit
PB: predicated region body
PF: predicated region fallthrough
CT: control target
= control target key end

     0   :  { %vm26_vm0 = vcmask 1040384   ;;  %v1010_v1 = vmov 0.0   ;;  %vm1011_vm1 = vmmov 0   ;;  %vm17_vm2 = vcmask 68608   ;;  %s1240_s0 = inlined_call_operand.vmem [shape: f32[4,9], index: 0, kind: input, shape index: {}]   ;;  %s1241_s1 = inlined_call_operand.vmem [shape: f32[1,224,64], index: 1, kind: input, shape index: {}]   ;;  %s1242_s2 = inlined_call_operand.hbm [shape: f32[4,9], index: 2, kind: output, shape index: {}]  }
   0x1   :  { %v21_v0 = vld [vmem:[%s1241_s1 + $0xc8] sm:$0x1]  ;;  %886 = vmatprep.subr.mxu0 %v1010_v1  ;;  %v20_v2 = vld [vmem:[%s1241_s1 + $0xc0] sm:$0xff]  ;;  %890 = vmatprep.mubr.msk.f32.mxu0 %vm1011_vm1, %v1010_v1 }
   0x2   :  { %v16_v3 = vld [vmem:[%s1240_s0] sm:$0xf] }
   0x3   :  { %7 = vsyncpa [#allocation4], 0  ;;  %887 = vmatpush3.msk.msra.mxu0 %vm26_vm0, %v21_v0  ;;  %18 = vst.msk [vmem:[#allocation2] sm:$0xf] %vm17_vm2, %v16_v3  ;;  %905 = vmatprep.subr.mxu1 %v1010_v1  ;;  %vm22_vm3 = vcmask 72704   ;;  %v100_v6 = vld [vmem:[%s1241_s1 + $0xc9] sm:$0xff]  ;;  %v270_v28 = vlaneseq }
   0x4   :  { %888 = vmatprep.subr.mxu0 %v1010_v1  ;;  %921 = vmatprep.mubr.msk.f32.mxu1 %vm1011_vm1, %v1010_v1  ;;  %v101_v5 = vld [vmem:[%s1241_s1 + $0xd1] sm:$0x1]  ;;  %s1012_s18 = smov 64   ;;  %vm180_vm4 = vcmask 523264   ;;  %vm186_vm5 = vcmask 1043456   ;;  %vm182_vm6 = vcmask 31744  }
   0x5   :  { %889 = vmatpush3.msra.mxu0 %v20_v2  ;;  %v1013_v14 = vmov 1.0   ;;  %v304_v19 = vld [vmem:[%s1241_s1 + $0x38] sm:$0xff]  ;;  %v303_v20 = vld [vmem:[%s1241_s1 + $0x30] sm:$0xff]  ;;  %v302_v21 = vld [vmem:[%s1241_s1 + $0x28] sm:$0xff]  ;;  %v271_v31 = vshrl.u32 %v270_v28, 7  ;;  %s1014_s24 = smov 120  }
   0x6   :  { %893 = vmatprep.subr.mxu0 %v1010_v1  ;;  %906 = vmatpush3.msra.mxu1 %v304_v19  ;;  %v301_v22 = vld [vmem:[%s1241_s1 + $0x20] sm:$0xff]  ;;  %v300_v27 = vld [vmem:[%s1241_s1 + $0x18] sm:$0xff]  ;;  %v299_v29 = vld [vmem:[%s1241_s1 + $0x10] sm:$0xff]  ;;  %vm798_vm7 = vcmask 60416   ;;  %s1015_s29 = smov [#allocation3]   ;;  %vm803_vm8 = vcmask 64512  }
   0x7   :  { %907 = vmatprep.subr.mxu1 %v1010_v1  ;;  %v298_v30 = vld [vmem:[%s1241_s1 + $0x8] sm:$0xff]  ;;  %v297_v32 = vld [vmem:[%s1241_s1] sm:$0xff]  ;;  %v1110_v33 = vsub.s32 0, %v271_v31  ;;  %v831_v38 = vld [vmem:[%s1241_s1 + $0xd2] ss:$0 sm:$0xff]  ;;  %s817_s30 = sshll.u32 %s1015_s29, 4  ;;  %s818_s30 = int_to_ptr.vmem [resolvable:$true] %s817_s30 }
   0x8   :  { %908 = vmatpush3.msra.mxu1 %v303_v20  ;;  %v832_v41 = vld [vmem:[%s1241_s1 + $0xd5] ss:$0 sm:$0xff]  ;;  %v501_v54 = vld [vmem:[%s1241_s1 + $0x78] sm:$0xff]  ;;  %v499_v56 = vld [vmem:[%s1241_s1 + $0x68] sm:$0xff]  ;;  %p993_p1 = scmp.lt.s32.totalorder %s818_s30, %s818_s30 }
   0x9   :  { %909 = vmatprep.subr.mxu1 %v1010_v1  ;;  %v500_v55 = vld [vmem:[%s1241_s1 + $0x70] sm:$0xff]  ;;  %v498_v57 = vld [vmem:[%s1241_s1 + $0x60] sm:$0xff]  ;;  %v497_v62 = vld [vmem:[%s1241_s1 + $0x58] sm:$0xff] }
   0xa   :  { %v1050_v4 = vld [vmem:[#allocation2] sm:$0xf]  ;;  %910 = vmatpush3.msra.mxu1 %v302_v21  ;;  %v496_v63 = vld [vmem:[%s1241_s1 + $0x50] sm:$0xff]  ;;  %v495_v0 = vld [vmem:[%s1241_s1 + $0x48] sm:$0xff] }
   0xb   :  { %891 = vmatmul.mubr.msk.f32.vlgmr.msra.gmra.mxu0 %vm22_vm3, %v1050_v4  ;;  %911 = vmatprep.subr.mxu1 %v1010_v1  ;;  %v494_v2 = vld [vmem:[%s1241_s1 + $0x40] sm:$0xff] }
   0xc   :  { %897 = vmatprep.mubr.msk.f32.mxu0 %vm1011_vm1, %v1010_v1  ;;  %894 = vmatpush3.msk.msra.mxu0 %vm26_vm0, %v101_v5  ;;  %v695_v28 = vld [vmem:[%s1241_s1 + $0xa0] sm:$0xff] }
   0xd   :  { %895 = vmatprep.subr.mxu0 %v1010_v1  ;;  %912 = vmatpush3.msra.mxu1 %v301_v22 }
   0xe   :  { %896 = vmatpush3.msra.mxu0 %v100_v6  ;;  %913 = vmatprep.subr.mxu1 %v1010_v1 }
   0xf   :  { %898 = vmatmul.mubr.msk.f32.vlgmr.msra.gmra.mxu0 %vm22_vm3, %v1050_v4  ;;  %900 = vmatprep.subr.mxu0 %v1010_v1 }
  0x10   :  { %902 = vmatprep.mubr.msk.f32.mxu0 %vm1011_vm1, %v1010_v1  ;;  %914 = vmatpush3.msra.mxu1 %v300_v27  ;;  %v697_v27 = vld [vmem:[%s1241_s1 + $0xb0] sm:$0xff] }
  0x11   :  { %915 = vmatprep.subr.mxu1 %v1010_v1 }
  0x12   :  { %916 = vmatpush3.msra.mxu1 %v299_v29 }
  0x13   :  { %917 = vmatprep.subr.mxu1 %v1010_v1 }
  0x14   :  { %918 = vmatpush3.msra.mxu1 %v298_v30 }
  0x15   :  { %919 = vmatprep.subr.mxu1 %v1010_v1 }
  0x16   :  { %920 = vmatpush3.msra.mxu1 %v297_v32 }
  0x17   :  { %948 = vmatprep.subr.mxu1 %v1010_v1 }
  0xcb   :  { %v96_v7 = vpop.f32.mrf.mxu0 }
  0xcc   :  { %v175_v8 = vmul.f32 %v96_v7, %v96_v7 }
  0xcd   :  { %v892_v9 = vpop.f32.mrf.mxu0 }
  0xce   :  { %177 = vrot.lane.b32.xlu0 %v175_v8, %s1012_s18  ;;  %v836_v8 = vld [vmem:[%s1241_s1 + $0xd3] ss:$0 sm:$0xff] }
  0xcf   :  { %v1068_v10 = vpop.f32.mrf.mxu0 }
  0xd1   :  { %v899_v11 = vpop.f32.mrf.mxu0 }
 0x140   :  { %v178_v12 = vpop.permute.xlu0 %177 }
 0x141   :  { %v181_v13 = vsel %vm180_vm4, %v96_v7, %v178_v12  ;;  %v837_v12 = vld [vmem:[%s1241_s1 + $0xd6] ss:$0 sm:$0xff] }
 0x142   :  { %901 = vmatpush3.msk.msra.mxu0 %vm186_vm5, %v181_v13 }
 0x143   :  { %903 = vmatmul.mubr.msk.f32.vlgmr.msra.gmra.mxu0 %vm182_vm6, %v1013_v14  ;;  %924 = vmatprep.subr.mxu0 %v1010_v1 }
 0x144   :  { %926 = vmatprep.mubr.msk.f32.mxu0 %vm1011_vm1, %v1010_v1 }
 0x203   :  { %v256_v15 = vpop.f32.mrf.mxu0 }
 0x204   :  { %v260_v16 = vmul.f32 0.25, %v256_v15 }
 0x205   :  { %v904_v17 = vpop.f32.mrf.mxu0 }
 0x206   :  { %v261_v18 = vmul.f32 %v260_v16, %v260_v16  ;;  %v273_v36 = vrot.slane %v260_v16, %v1110_v33 }
 0x208   :  { %263 = vrot.lane.b32.xlu0 %v261_v18, %s1012_s18  ;;  %v274_v37 = vsub.f32 %v96_v7, %v273_v36  ;;  %v692_v36 = vld [vmem:[%s1241_s1 + $0x88] sm:$0xff] }
 0x27a   :  { %v264_v23 = vpop.permute.xlu0 %263 }
 0x27b   :  { %v266_v24 = vsub.f32 %v260_v16, %v264_v23 }
 0x27d   :  { %v267_v25 = vmax.f32 %v266_v24, 0.0 }
 0x27f   :  { %v275_v26 = vadd.f32 1e-05, %v267_v25 }
 0x281   :  { %978 = vrsqrt.f32 %v275_v26  ;;  %v698_v26 = vld [vmem:[%s1241_s1 + $0xb8] sm:$0xff] }
 0x28e   :  { %v979_v34 = vpop.eup %978 }
 0x28f   :  { %v280_v35 = vrot.slane %v979_v34, %v1110_v33  ;;  %v694_v34 = vld [vmem:[%s1241_s1 + $0x98] sm:$0xff] }
 0x291   :  { %282 = vrot.lane.b32.xlu1 %v280_v35, %s1012_s18  ;;  %v693_v35 = vld [vmem:[%s1241_s1 + $0x90] sm:$0xff] }
 0x303   :  { %v283_v39 = vpop.permute.xlu1 %282 }
 0x304   :  { %v285_v40 = vmul.f32 %v283_v39, %v274_v37  ;;  %v691_v37 = vld [vmem:[%s1241_s1 + $0x80] sm:$0xff] }
 0x306   :  { %v290_v42 = vmul.f32 %v831_v38, %v285_v40 }
 0x308   :  { %v295_v43 = vadd.f32 %v832_v41, %v290_v42  ;;  %v841_v42 = vld [vmem:[%s1241_s1 + $0xd4] ss:$0 sm:$0xff] }
 0x30a   :  { %v296_v44 = vmax.f32 %v295_v43, 0.0 }
 0x30c   :  { %922 = vmatmul.mubr.msk.f32.vlgmr.msra.gmra.mxu1 %vm180_vm4, %v296_v44 }
 0x30d   :  { %950 = vmatprep.mubr.msk.f32.mxu1 %vm1011_vm1, %v1010_v1 }
 0x3cc   :  { %v374_v45 = vpop.f32.mrf.mxu1 }
 0x3cd   :  { %v378_v46 = vmul.f32 %v374_v45, %v374_v45 }
 0x3ce   :  { %v923_v47 = vpop.f32.mrf.mxu1 }
 0x3cf   :  { %380 = vrot.lane.b32.xlu1 %v378_v46, %s1012_s18 }
 0x441   :  { %v381_v48 = vpop.permute.xlu1 %380 }
 0x442   :  { %v383_v49 = vsel %vm180_vm4, %v374_v45, %v381_v48 }
 0x443   :  { %925 = vmatpush3.msk.msra.mxu0 %vm186_vm5, %v383_v49 }
 0x444   :  { %927 = vmatmul.mubr.msk.f32.vlgmr.msra.gmra.mxu0 %vm182_vm6, %v1013_v14  ;;  %929 = vmatprep.subr.mxu0 %v1010_v1 }
 0x445   :  { %945 = vmatprep.mubr.msk.f32.mxu0 %vm1011_vm1, %v1010_v1  ;;  %930 = vmatpush3.msra.mxu0 %v501_v54 }
 0x446   :  { %931 = vmatprep.subr.mxu0 %v1010_v1 }
 0x447   :  { %932 = vmatpush3.msra.mxu0 %v500_v55 }
 0x448   :  { %933 = vmatprep.subr.mxu0 %v1010_v1 }
 0x449   :  { %934 = vmatpush3.msra.mxu0 %v499_v56 }
 0x44a   :  { %935 = vmatprep.subr.mxu0 %v1010_v1 }
 0x44b   :  { %936 = vmatpush3.msra.mxu0 %v498_v57 }
 0x44c   :  { %937 = vmatprep.subr.mxu0 %v1010_v1 }
 0x44d   :  { %938 = vmatpush3.msra.mxu0 %v497_v62 }
 0x44e   :  { %939 = vmatprep.subr.mxu0 %v1010_v1 }
 0x44f   :  { %940 = vmatpush3.msra.mxu0 %v496_v63 }
 0x450   :  { %941 = vmatprep.subr.mxu0 %v1010_v1 }
 0x451   :  { %942 = vmatpush3.msra.mxu0 %v495_v0 }
 0x452   :  { %943 = vmatprep.subr.mxu0 %v1010_v1 }
 0x453   :  { %944 = vmatpush3.msra.mxu0 %v494_v2 }
 0x504   :  { %v453_v50 = vpop.f32.mrf.mxu0 }
 0x505   :  { %v457_v51 = vmul.f32 0.25, %v453_v50 }
 0x506   :  { %v928_v52 = vpop.f32.mrf.mxu0 }
 0x507   :  { %v458_v53 = vmul.f32 %v457_v51, %v457_v51  ;;  %v470_v6 = vrot.slane %v457_v51, %v1110_v33 }
 0x509   :  { %460 = vrot.lane.b32.xlu0 %v458_v53, %s1012_s18  ;;  %v471_v7 = vsub.f32 %v374_v45, %v470_v6  ;;  %v846_v53 = vld [vmem:[%s1241_s1 + $0xda] ss:$0 sm:$0xff] }
 0x57b   :  { %v461_v58 = vpop.permute.xlu0 %460 }
 0x57c   :  { %v463_v59 = vsub.f32 %v457_v51, %v461_v58  ;;  %v845_v51 = vld [vmem:[%s1241_s1 + $0xd9] ss:$0 sm:$0xff] }
 0x57e   :  { %v464_v60 = vmax.f32 %v463_v59, 0.0 }
 0x580   :  { %v472_v61 = vadd.f32 1e-05, %v464_v60 }
 0x582   :  { %980 = vrsqrt.f32 %v472_v61 }
 0x58f   :  { %v981_v3 = vpop.eup %980 }
 0x590   :  { %v477_v5 = vrot.slane %v981_v3, %v1110_v33 }
 0x592   :  { %479 = vrot.lane.b32.xlu1 %v477_v5, %s1012_s18 }
 0x604   :  { %v480_v9 = vpop.permute.xlu1 %479 }
 0x605   :  { %v482_v11 = vmul.f32 %v480_v9, %v471_v7 }
 0x607   :  { %v487_v13 = vmul.f32 %v836_v8, %v482_v11 }
 0x609   :  { %v492_v15 = vadd.f32 %v837_v12, %v487_v13 }
 0x60b   :  { %v493_v16 = vmax.f32 %v492_v15, 0.0 }
 0x60d   :  { %946 = vmatmul.mubr.msk.f32.vlgmr.msra.gmra.mxu0 %vm180_vm4, %v493_v16 }
 0x6cd   :  { %v571_v17 = vpop.f32.mrf.mxu0 }
 0x6ce   :  { %v575_v18 = vmul.f32 %v571_v17, %v571_v17 }
 0x6cf   :  { %v947_v19 = vpop.f32.mrf.mxu0 }
 0x6d0   :  { %577 = vrot.lane.b32.xlu0 %v575_v18, %s1012_s18 }
 0x742   :  { %v578_v20 = vpop.permute.xlu0 %577 }
 0x743   :  { %v580_v21 = vsel %vm180_vm4, %v571_v17, %v578_v20 }
 0x744   :  { %949 = vmatpush3.msk.msra.mxu1 %vm186_vm5, %v580_v21 }
 0x745   :  { %951 = vmatmul.mubr.msk.f32.vlgmr.msra.gmra.mxu1 %vm182_vm6, %v1013_v14  ;;  %953 = vmatprep.subr.mxu1 %v1010_v1  ;;  %v696_v14 = vld [vmem:[%s1241_s1 + $0xa8] sm:$0xff] }
 0x746   :  { %969 = vmatprep.mubr.msk.f32.mxu1 %vm1011_vm1, %v1010_v1  ;;  %954 = vmatpush3.msra.mxu1 %v698_v26 }
 0x747   :  { %955 = vmatprep.subr.mxu1 %v1010_v1 }
 0x748   :  { %956 = vmatpush3.msra.mxu1 %v697_v27 }
 0x749   :  { %957 = vmatprep.subr.mxu1 %v1010_v1 }
 0x74a   :  { %958 = vmatpush3.msra.mxu1 %v696_v14 }
 0x74b   :  { %959 = vmatprep.subr.mxu1 %v1010_v1 }
 0x74c   :  { %960 = vmatpush3.msra.mxu1 %v695_v28 }
 0x74d   :  { %961 = vmatprep.subr.mxu1 %v1010_v1 }
 0x74e   :  { %962 = vmatpush3.msra.mxu1 %v694_v34 }
 0x74f   :  { %963 = vmatprep.subr.mxu1 %v1010_v1 }
 0x750   :  { %964 = vmatpush3.msra.mxu1 %v693_v35 }
 0x751   :  { %965 = vmatprep.subr.mxu1 %v1010_v1 }
 0x752   :  { %966 = vmatpush3.msra.mxu1 %v692_v36 }
 0x753   :  { %967 = vmatprep.subr.mxu1 %v1010_v1  ;;  %v842_v1 = vld [vmem:[%s1241_s1 + $0xd7] ss:$0 sm:$0xff] }
 0x754   :  { %968 = vmatpush3.msra.mxu1 %v691_v37 }
 0x805   :  { %v650_v22 = vpop.f32.mrf.mxu1 }
 0x806   :  { %v654_v23 = vmul.f32 0.25, %v650_v22 }
 0x807   :  { %v952_v24 = vpop.f32.mrf.mxu1 }
 0x808   :  { %v655_v25 = vmul.f32 %v654_v23, %v654_v23  ;;  %v667_v40 = vrot.slane %v654_v23, %v1110_v33 }
 0x80a   :  { %657 = vrot.lane.b32.xlu1 %v655_v25, %s1012_s18  ;;  %v668_v41 = vsub.f32 %v571_v17, %v667_v40 }
 0x87c   :  { %v658_v29 = vpop.permute.xlu1 %657 }
 0x87d   :  { %v660_v30 = vsub.f32 %v654_v23, %v658_v29 }
 0x87f   :  { %v661_v31 = vmax.f32 %v660_v30, 0.0 }
 0x881   :  { %v669_v32 = vadd.f32 1e-05, %v661_v31 }
 0x883   :  { %982 = vrsqrt.f32 %v669_v32 }
 0x890   :  { %v983_v38 = vpop.eup %982 }
 0x891   :  { %v674_v39 = vrot.slane %v983_v38, %v1110_v33  ;;  %v843_v33 = vld [vmem:[%s1241_s1 + $0xd8] ss:$0 sm:$0xff]  ;;  %s988_s1 = scalar_lea.vmem %s818_s30, 64 }
 0x892   :  { %p989_p0 = scmp.ne.s32.totalorder %s818_s30, %s988_s1  ;;  %p994_p2 = scmp.lt.s32.totalorder %s988_s1, %s988_s1 }
 0x893   :  { %676 = vrot.lane.b32.xlu0 %v674_v39, %s1012_s18 }
 0x894   :  { %p995_p3 = por %p994_p2, %p993_p1 }
 0x896   :  { %p996_p4 = pnand %p995_p3, %p989_p0 }
 0x905   :  { %v677_v43 = vpop.permute.xlu0 %676 }
 0x906   :  { %v679_v44 = vmul.f32 %v677_v43, %v668_v41 }
 0x908   :  { %v684_v45 = vmul.f32 %v841_v42, %v679_v44 }
 0x90a   :  { %v689_v46 = vadd.f32 %v842_v1, %v684_v45 }
 0x90c   :  { %v690_v47 = vmax.f32 %v689_v46, 0.0 }
 0x90e   :  { %970 = vmatmul.mubr.msk.f32.vlgmr.msra.gmra.mxu1 %vm180_vm4, %v690_v47 }
 0x9ce   :  { %v773_v48 = vpop.f32.mrf.mxu1 }
 0x9cf   :  { %v774_v49 = vadd.f32 %v843_v33, %v773_v48 }
 0x9d0   :  { %v971_v50 = vpop.f32.mrf.mxu1 }
 0x9d1   :  { %984 = vtanh.f32 %v774_v49  ;;  %794 = vrot.lane.b32.xlu0 %v774_v49, %s1014_s24 }
 0x9de   :  { %v985_v52 = vpop.eup %984 }
 0x9df   :  { %v783_v54 = vmul.f32 %v985_v52, %v845_v51 }
 0x9e1   :  { %v789_v55 = vadd.f32 %v846_v53, %v783_v54 }
 0x9e3   :  { %v799_v56 = vsel %vm798_vm7, %v789_v55, 0.0  ;;  %v790_v57 = vmul.f32 1.442695, %v789_v55 }
 0x9e4   :  { %800 = vadd.xlane.f32.xlu1 %v799_v56 }
 0x9e5   :  { %986 = vpow2.f32 %v790_v57 }
 0x9f2   :  { %v987_v58 = vpop.eup %986 }
 0x9f3   :  { %v792_v60 = vmul.f32 %v987_v58, %v1068_v10 }
 0xa43   :  { %v795_v59 = vpop.permute.xlu0 %794 }
 0xa44   :  { %v797_v62 = vadd.f32 %v795_v59, %v792_v60 }
 0xa6d   :  { %v801_v61 = vpop.xlane.xlu1 %800 }
 0xa6e   :  { %v802_v63 = vadd.f32 %v801_v61, %v1050_v4 }
 0xa70   :  { %v804_v0 = vsel %vm803_vm8, %v797_v62, %v802_v63 }
 0xa71   :  { %806 = vst.msk [vmem:[#allocation2] sm:$0xf] %vm17_vm2, %v804_v0  ;;  %810 = vst.msk [vmem:[#allocation3] sm:$0xf] %vm17_vm2, %v804_v0 }
 0xa72   :  { %999 = shalt.err (!%p996_p4)
}
 0xa73   :  { %820 = dma.vmem_to_hbm [thread:$0]  %s818_s30, 64, %s1242_s2, [#allocation4]  }
 0xa74   :  { %1008 = dma.done.wait [#allocation4], 64  }
 0xa75   :  { %1009 = vsyncadd [#allocation4], 4294967232 }
 0xa76   :  { %824 = vsyncpa [#allocation4], 1 }

</bundles_post_ra>
